<compile_context>
chip_gen: v7x
topology: tpu7x:2x2x1
jax: 0.10.0
libtpu: 0.0.40
codegen_flags: <defaults>
</compile_context>

<pallas_src>
import functools

import jax
import jax.numpy as jnp
from jax.experimental import pallas as pl
from jax.experimental.pallas import tpu as pltpu


# ----------------------------- configuration ------------------------------ #
BATCH = 2
SEQ = 8                 # number of humans (LSTM sequence length)
INPUT_DIM = 13          # length of a joint (self + human) state
SELF_STATE_DIM = 6
LSTM_HIDDEN = 32
MLP_DIMS = [64, 32, 1]  # mlp(self_state_dim + lstm_hidden_dim, mlp_dims)


def _round8(n: int) -> int:
    """Round up to the f32 sublane count so sections/rows start tile-aligned."""
    return ((n + 7) // 8) * 8


H = LSTM_HIDDEN
D_PAD = _round8(INPUT_DIM)          # 16
W = 4 * H                            # 128 lanes: slab width & gate width
M1, M2, M3 = MLP_DIMS

# Single packed parameter slab: (TOTAL_ROWS, 128) f32, every section 8-aligned.
OFF_WIH = 0                          # (D_PAD, 4H)  rows D..D_PAD-1 zero
OFF_WHH = OFF_WIH + D_PAD            # (H, 4H)
OFF_BL = OFF_WHH + H                 # (1, 4H) = b_ih + b_hh
OFF_W1S = OFF_BL + 8                 # (D_PAD, M1)  rows SD..D_PAD-1 zero
OFF_W1H = OFF_W1S + D_PAD            # (H, M1)
OFF_B1 = OFF_W1H + H                 # (1, M1)
OFF_W2 = OFF_B1 + 8                  # (128, M2)    rows M1..127 zero
OFF_B2 = OFF_W2 + 128                # (1, M2)
OFF_W3 = OFF_B2 + 8                  # (128, M3)    rows M2..127 zero
OFF_B3 = OFF_W3 + 128                # (1, M3)
TOTAL_ROWS = OFF_B3 + 8              # 384 rows * 128 lanes * 4B ~= 192 KiB


# ------------------------------- the kernel -------------------------------- #
def value_net_kernel(state_ref, params_ref, out_ref, *, batch, b_pad, seq):
    """state_ref: (seq*b_pad, D_PAD) f32 time-major, params_ref: (TOTAL_ROWS, 128)."""
    p = params_ref

    # --- unpack parameters (static, sublane-aligned slices); weights -> bf16 once
    w_ih = p[OFF_WIH:OFF_WIH + D_PAD, :].astype(jnp.bfloat16)   # (16, 128)
    w_hh = p[OFF_WHH:OFF_WHH + H, :].astype(jnp.bfloat16)       # (32, 128)
    b_lstm = p[OFF_BL:OFF_BL + 1, :]                            # (1, 128) f32
    w1s = p[OFF_W1S:OFF_W1S + D_PAD, :].astype(jnp.bfloat16)    # (16, 128)
    w1h = p[OFF_W1H:OFF_W1H + H, :].astype(jnp.bfloat16)        # (32, 128)
    b1 = p[OFF_B1:OFF_B1 + 1, :]
    w2 = p[OFF_W2:OFF_W2 + 128, :].astype(jnp.bfloat16)         # (128, 128)
    b2 = p[OFF_B2:OFF_B2 + 1, :]
    w3 = p[OFF_W3:OFF_W3 + 128, :].astype(jnp.bfloat16)         # (128, 128)
    b3 = p[OFF_B3:OFF_B3 + 1, :]

    state_tm = state_ref[...]                                   # (S*b_pad, 16) f32

    # Hoisted input projection + bias: ONE matmul + ONE bias add for all steps.
    gates_x = (
        jnp.dot(state_tm.astype(jnp.bfloat16), w_ih,
                preferred_element_type=jnp.float32)
        + b_lstm
    )                                                            # (S*b_pad, 128)

    # Per-lane affine constants so ONE tanh per step covers i/f/o (sigmoid) and g
    # (tanh):  sigmoid(x) = 0.5 * tanh(0.5*x) + 0.5.  Hoisted out of the loop.
    lane = jax.lax.broadcasted_iota(jnp.int32, (1, W), 1)
    is_g = jnp.logical_and(lane >= 2 * H, lane < 3 * H)
    pre_scale = jnp.where(is_g, 1.0, 0.5).astype(jnp.float32)    # (1, 128)
    post_scale = pre_scale
    post_bias = jnp.where(is_g, 0.0, 0.5).astype(jnp.float32)

    h = jnp.zeros((b_pad, H), jnp.float32)
    c = jnp.zeros((b_pad, H), jnp.float32)

    # Short fixed-length recurrence -> fully unrolled at trace time.
    for t in range(seq):
        gates = gates_x[t * b_pad:(t + 1) * b_pad, :] + jnp.dot(
            h.astype(jnp.bfloat16), w_hh, preferred_element_type=jnp.float32)
        act = jnp.tanh(gates * pre_scale) * post_scale + post_bias  # (b_pad, 128)
        i_g = act[:, 0 * H:1 * H]
        f_g = act[:, 1 * H:2 * H]
        g_g = act[:, 2 * H:3 * H]
        o_g = act[:, 3 * H:4 * H]
        c = f_g * c + i_g * g_g
        h = o_g * jnp.tanh(c)

    # self_state = state[:, 0, :self_state_dim]; in time-major layout that is the
    # first b_pad rows; w1s has zero rows beyond self_state_dim, so no lane slice
    # (and no concat) is needed: concat([s, h]) @ W1 == s@W1s + h@W1h.
    row0 = state_tm[0:b_pad, :]                                  # (b_pad, 16)

    x = (jnp.dot(row0.astype(jnp.bfloat16), w1s, preferred_element_type=jnp.float32)
         + jnp.dot(h.astype(jnp.bfloat16), w1h, preferred_element_type=jnp.float32)
         + b1)
    x = jnp.maximum(x, 0.0)

    x = jnp.dot(x.astype(jnp.bfloat16), w2, preferred_element_type=jnp.float32) + b2
    x = jnp.maximum(x, 0.0)

    x = jnp.dot(x.astype(jnp.bfloat16), w3, preferred_element_type=jnp.float32) + b3

    out_ref[...] = x[0:batch, 0:M3]


# --------------------------- parameter packing ------------------------------ #
def pack_params(params):
    """Fuse ALL parameters into one (TOTAL_ROWS, 128) f32 slab. Call ONCE at init."""
    SD = SELF_STATE_DIM
    slab = jnp.zeros((TOTAL_ROWS, W), jnp.float32)
    slab = slab.at[OFF_WIH:OFF_WIH + INPUT_DIM, :].set(params["w_ih"])
    slab = slab.at[OFF_WHH:OFF_WHH + H, :].set(params["w_hh"])
    slab = slab.at[OFF_BL:OFF_BL + 1, :].set(params["b_lstm"])
    w1 = params["w1"]                                            # (SD + H, M1)
    slab = slab.at[OFF_W1S:OFF_W1S + SD, 0:M1].set(w1[:SD])
    slab = slab.at[OFF_W1H:OFF_W1H + H, 0:M1].set(w1[SD:])
    slab = slab.at[OFF_B1:OFF_B1 + 1, 0:M1].set(params["b1"])
    slab = slab.at[OFF_W2:OFF_W2 + M1, 0:M2].set(params["w2"])
    slab = slab.at[OFF_B2:OFF_B2 + 1, 0:M2].set(params["b2"])
    slab = slab.at[OFF_W3:OFF_W3 + M2, 0:M3].set(params["w3"])
    slab = slab.at[OFF_B3:OFF_B3 + 1, 0:M3].set(params["b3"])
    return slab


# ------------------------------ python wrapper ------------------------------ #
@jax.jit
def value_network1_forward(state, packed_params):
    """state: (B, S, D) f32; packed_params: (TOTAL_ROWS, 128) f32 from pack_params."""
    B, S, D = state.shape
    b_pad = _round8(B)

    # Layout plumbing (fuses into one dispatch under jit): time-major, batch
    # padded to a full sublane tile, input dim padded to 16 lanes.
    state_tm = jnp.transpose(state, (1, 0, 2))                   # (S, B, D)
    state_tm = jnp.pad(state_tm, ((0, 0), (0, b_pad - B), (0, D_PAD - D)))
    state_tm = state_tm.reshape(S * b_pad, D_PAD)

    kernel = functools.partial(value_net_kernel, batch=B, b_pad=b_pad, seq=S)

    # NOTE: at realistic batch sizes, add grid=(B // TILE_B,) with TILE_B a
    # multiple of 8, dimension_semantics=("parallel",) (2 TCs on v7x), keep the
    # packed weight slab untiled/VMEM-resident (constant index_map), and emit a
    # lane-dense (1, TILE_B) output. At B=2 a single invocation is lowest latency.
    vmem = pl.BlockSpec(memory_space=pltpu.MemorySpace.VMEM)
    return pl.pallas_call(
        kernel,
        out_shape=jax.ShapeDtypeStruct((B, M3), jnp.float32),
        in_specs=[vmem, vmem],
        out_specs=vmem,
    )(state_tm, packed_params)


# -------------------------- deterministic parameters ------------------------ #
def make_params(key):
    D = INPUT_DIM
    din = SELF_STATE_DIM + H
    dims = [din] + MLP_DIMS

    keys = jax.random.split(key, 4 + 2 * len(MLP_DIMS))
    scale = 0.1

    # LSTM weights stored pre-transposed for right-multiplication (x @ W).
    w_ih = scale * jax.random.normal(keys[0], (D, 4 * H), jnp.float32)
    w_hh = scale * jax.random.normal(keys[1], (H, 4 * H), jnp.float32)
    b_ih = scale * jax.random.normal(keys[2], (1, 4 * H), jnp.float32)
    b_hh = scale * jax.random.normal(keys[3], (1, 4 * H), jnp.float32)

    params = {"w_ih": w_ih, "w_hh": w_hh, "b_lstm": b_ih + b_hh}
    for li in range(len(MLP_DIMS)):
        kw = keys[4 + 2 * li]
        kb = keys[5 + 2 * li]
        params[f"w{li + 1}"] = scale * jax.random.normal(
            kw, (dims[li], dims[li + 1]), jnp.float32)
        params[f"b{li + 1}"] = scale * jax.random.normal(
            kb, (1, dims[li + 1]), jnp.float32)
    return params


# ------------------------------ pure-JAX reference --------------------------- #
def reference_forward(state, params):
    B, S, _ = state.shape
    hp = jax.lax.Precision.HIGHEST
    h = jnp.zeros((B, H), jnp.float32)
    c = jnp.zeros((B, H), jnp.float32)
    for t in range(S):
        gates = (jnp.dot(state[:, t, :], params["w_ih"], precision=hp)
                 + jnp.dot(h, params["w_hh"], precision=hp)
                 + params["b_lstm"])
        i_g = jax.nn.sigmoid(gates[:, 0 * H:1 * H])
        f_g = jax.nn.sigmoid(gates[:, 1 * H:2 * H])
        g_g = jnp.tanh(gates[:, 2 * H:3 * H])
        o_g = jax.nn.sigmoid(gates[:, 3 * H:4 * H])
        c = f_g * c + i_g * g_g
        h = o_g * jnp.tanh(c)
    joint = jnp.concatenate([state[:, 0, :SELF_STATE_DIM], h], axis=1)
    x = jnp.maximum(jnp.dot(joint, params["w1"], precision=hp) + params["b1"], 0.0)
    x = jnp.maximum(jnp.dot(x, params["w2"], precision=hp) + params["b2"], 0.0)
    return jnp.dot(x, params["w3"], precision=hp) + params["b3"]


if __name__ == "__main__":
    key = jax.random.PRNGKey(0)
    k_state, k_params = jax.random.split(key)

    state = jax.random.normal(k_state, (BATCH, SEQ, INPUT_DIM), jnp.float32)
    params = make_params(k_params)

    # Pack once at init (not on the per-call path).
    packed = pack_params(params)
    jax.block_until_ready(packed)

    value = value_network1_forward(state, packed)
    jax.block_until_ready(value)
    assert value.shape == (BATCH, MLP_DIMS[-1])

    ref = reference_forward(state, params)
    err = float(jnp.max(jnp.abs(value - ref)))
    assert err < 2e-2, f"kernel/reference mismatch: max abs err = {err}"

    print("KERNEL_OK")
</pallas_src>

<mosaic_0001>
module attributes {stable_mosaic.version = 11 : i64} {
  func.func @value_net_kernel(%arg0: memref<64x16xf32, #tpu.memory_space<vmem>>, %arg1: memref<384x128xf32, #tpu.memory_space<vmem>>, %arg2: memref<2x1xf32, #tpu.memory_space<vmem>>) attributes {dimension_semantics = [], scalar_prefetch = 0 : i64, scratch_operands = 0 : i64, tpu.core_type = #tpu.core_type<tc>} {
    %c0 = arith.constant 0 : index
    %c0_0 = arith.constant 0 : index
    %0 = vector.load %arg1[%c0, %c0_0] : memref<384x128xf32, #tpu.memory_space<vmem>>, vector<16x128xf32>
    %1 = arith.truncf %0 : vector<16x128xf32> to vector<16x128xbf16>
    %c16 = arith.constant 16 : index
    %c0_1 = arith.constant 0 : index
    %2 = vector.load %arg1[%c16, %c0_1] : memref<384x128xf32, #tpu.memory_space<vmem>>, vector<32x128xf32>
    %3 = arith.truncf %2 : vector<32x128xf32> to vector<32x128xbf16>
    %c48 = arith.constant 48 : index
    %c0_2 = arith.constant 0 : index
    %4 = vector.load %arg1[%c48, %c0_2] : memref<384x128xf32, #tpu.memory_space<vmem>>, vector<1x128xf32>
    %c56 = arith.constant 56 : index
    %c0_3 = arith.constant 0 : index
    %5 = vector.load %arg1[%c56, %c0_3] : memref<384x128xf32, #tpu.memory_space<vmem>>, vector<16x128xf32>
    %6 = arith.truncf %5 : vector<16x128xf32> to vector<16x128xbf16>
    %c72 = arith.constant 72 : index
    %c0_4 = arith.constant 0 : index
    %7 = vector.load %arg1[%c72, %c0_4] : memref<384x128xf32, #tpu.memory_space<vmem>>, vector<32x128xf32>
    %8 = arith.truncf %7 : vector<32x128xf32> to vector<32x128xbf16>
    %c104 = arith.constant 104 : index
    %c0_5 = arith.constant 0 : index
    %9 = vector.load %arg1[%c104, %c0_5] : memref<384x128xf32, #tpu.memory_space<vmem>>, vector<1x128xf32>
    %c112 = arith.constant 112 : index
    %c0_6 = arith.constant 0 : index
    %10 = vector.load %arg1[%c112, %c0_6] : memref<384x128xf32, #tpu.memory_space<vmem>>, vector<128x128xf32>
    %11 = arith.truncf %10 : vector<128x128xf32> to vector<128x128xbf16>
    %c240 = arith.constant 240 : index
    %c0_7 = arith.constant 0 : index
    %12 = vector.load %arg1[%c240, %c0_7] : memref<384x128xf32, #tpu.memory_space<vmem>>, vector<1x128xf32>
    %c248 = arith.constant 248 : index
    %c0_8 = arith.constant 0 : index
    %13 = vector.load %arg1[%c248, %c0_8] : memref<384x128xf32, #tpu.memory_space<vmem>>, vector<128x128xf32>
    %14 = arith.truncf %13 : vector<128x128xf32> to vector<128x128xbf16>
    %c376 = arith.constant 376 : index
    %c0_9 = arith.constant 0 : index
    %15 = vector.load %arg1[%c376, %c0_9] : memref<384x128xf32, #tpu.memory_space<vmem>>, vector<1x128xf32>
    %c0_10 = arith.constant 0 : index
    %c0_11 = arith.constant 0 : index
    %16 = vector.load %arg0[%c0_10, %c0_11] : memref<64x16xf32, #tpu.memory_space<vmem>>, vector<64x16xf32>
    %17 = arith.truncf %16 : vector<64x16xf32> to vector<64x16xbf16>
    %cst = arith.constant dense<0.000000e+00> : vector<64x128xf32>
    %18 = tpu.matmul %17, %1, %cst {dimension_numbers = #tpu.dot_dimension_numbers<[1], [0], [0], [1], [0, 0, 1, 1], [], []>} : vector<64x16xbf16>, vector<16x128xbf16>, vector<64x128xf32> -> vector<64x128xf32>
    %19 = vector.broadcast %4 : vector<1x128xf32> to vector<64x128xf32>
    %20 = arith.addf %18, %19 : vector<64x128xf32>
    %21 = tpu.iota {dimensions = array<i32: 1>} : vector<1x128xi32>
    %c64_i32 = arith.constant 64 : i32
    %22 = vector.broadcast %c64_i32 : i32 to vector<1x128xi32>
    %23 = arith.cmpi sge, %21, %22 : vector<1x128xi32>
    %c96_i32 = arith.constant 96 : i32
    %24 = vector.broadcast %c96_i32 : i32 to vector<1x128xi32>
    %25 = arith.cmpi slt, %21, %24 : vector<1x128xi32>
    %26 = arith.andi %23, %25 : vector<1x128xi1>
    %cst_12 = arith.constant 1.000000e+00 : f32
    %cst_13 = arith.constant 5.000000e-01 : f32
    %27 = vector.broadcast %cst_12 : f32 to vector<1x128xf32>
    %28 = vector.broadcast %cst_13 : f32 to vector<1x128xf32>
    %29 = arith.select %26, %27, %28 : vector<1x128xi1>, vector<1x128xf32>
    %cst_14 = arith.constant 0.000000e+00 : f32
    %cst_15 = arith.constant 5.000000e-01 : f32
    %30 = vector.broadcast %cst_14 : f32 to vector<1x128xf32>
    %31 = vector.broadcast %cst_15 : f32 to vector<1x128xf32>
    %32 = arith.select %26, %30, %31 : vector<1x128xi1>, vector<1x128xf32>
    %cst_16 = arith.constant 0.000000e+00 : f32
    %33 = vector.broadcast %cst_16 : f32 to vector<8x32xf32>
    %cst_17 = arith.constant 0.000000e+00 : f32
    %34 = vector.broadcast %cst_17 : f32 to vector<8x32xf32>
    %35 = vector.extract_strided_slice %20 {offsets = [0, 0], sizes = [8, 128], strides = [1, 1]} : vector<64x128xf32> to vector<8x128xf32>
    %36 = arith.truncf %33 : vector<8x32xf32> to vector<8x32xbf16>
    %cst_18 = arith.constant dense<0.000000e+00> : vector<8x128xf32>
    %37 = tpu.matmul %36, %3, %cst_18 {dimension_numbers = #tpu.dot_dimension_numbers<[1], [0], [0], [1], [0, 0, 1, 1], [], []>} : vector<8x32xbf16>, vector<32x128xbf16>, vector<8x128xf32> -> vector<8x128xf32>
    %38 = arith.addf %35, %37 : vector<8x128xf32>
    %39 = vector.broadcast %29 : vector<1x128xf32> to vector<8x128xf32>
    %40 = arith.mulf %38, %39 : vector<8x128xf32>
    %41 = math.tanh %40 : vector<8x128xf32>
    %42 = vector.broadcast %29 : vector<1x128xf32> to vector<8x128xf32>
    %43 = arith.mulf %41, %42 : vector<8x128xf32>
    %44 = vector.broadcast %32 : vector<1x128xf32> to vector<8x128xf32>
    %45 = arith.addf %43, %44 : vector<8x128xf32>
    %46 = vector.extract_strided_slice %45 {offsets = [0, 0], sizes = [8, 32], strides = [1, 1]} : vector<8x128xf32> to vector<8x32xf32>
    %47 = vector.extract_strided_slice %45 {offsets = [0, 32], sizes = [8, 32], strides = [1, 1]} : vector<8x128xf32> to vector<8x32xf32>
    %48 = vector.extract_strided_slice %45 {offsets = [0, 64], sizes = [8, 32], strides = [1, 1]} : vector<8x128xf32> to vector<8x32xf32>
    %49 = vector.extract_strided_slice %45 {offsets = [0, 96], sizes = [8, 32], strides = [1, 1]} : vector<8x128xf32> to vector<8x32xf32>
    %50 = arith.mulf %47, %34 : vector<8x32xf32>
    %51 = arith.mulf %46, %48 : vector<8x32xf32>
    %52 = arith.addf %50, %51 : vector<8x32xf32>
    %53 = math.tanh %52 : vector<8x32xf32>
    %54 = arith.mulf %49, %53 : vector<8x32xf32>
    %55 = vector.extract_strided_slice %20 {offsets = [8, 0], sizes = [8, 128], strides = [1, 1]} : vector<64x128xf32> to vector<8x128xf32>
    %56 = arith.truncf %54 : vector<8x32xf32> to vector<8x32xbf16>
    %cst_19 = arith.constant dense<0.000000e+00> : vector<8x128xf32>
    %57 = tpu.matmul %56, %3, %cst_19 {dimension_numbers = #tpu.dot_dimension_numbers<[1], [0], [0], [1], [0, 0, 1, 1], [], []>} : vector<8x32xbf16>, vector<32x128xbf16>, vector<8x128xf32> -> vector<8x128xf32>
    %58 = arith.addf %55, %57 : vector<8x128xf32>
    %59 = vector.broadcast %29 : vector<1x128xf32> to vector<8x128xf32>
    %60 = arith.mulf %58, %59 : vector<8x128xf32>
    %61 = math.tanh %60 : vector<8x128xf32>
    %62 = vector.broadcast %29 : vector<1x128xf32> to vector<8x128xf32>
    %63 = arith.mulf %61, %62 : vector<8x128xf32>
    %64 = vector.broadcast %32 : vector<1x128xf32> to vector<8x128xf32>
    %65 = arith.addf %63, %64 : vector<8x128xf32>
    %66 = vector.extract_strided_slice %65 {offsets = [0, 0], sizes = [8, 32], strides = [1, 1]} : vector<8x128xf32> to vector<8x32xf32>
    %67 = vector.extract_strided_slice %65 {offsets = [0, 32], sizes = [8, 32], strides = [1, 1]} : vector<8x128xf32> to vector<8x32xf32>
    %68 = vector.extract_strided_slice %65 {offsets = [0, 64], sizes = [8, 32], strides = [1, 1]} : vector<8x128xf32> to vector<8x32xf32>
    %69 = vector.extract_strided_slice %65 {offsets = [0, 96], sizes = [8, 32], strides = [1, 1]} : vector<8x128xf32> to vector<8x32xf32>
    %70 = arith.mulf %67, %52 : vector<8x32xf32>
    %71 = arith.mulf %66, %68 : vector<8x32xf32>
    %72 = arith.addf %70, %71 : vector<8x32xf32>
    %73 = math.tanh %72 : vector<8x32xf32>
    %74 = arith.mulf %69, %73 : vector<8x32xf32>
    %75 = vector.extract_strided_slice %20 {offsets = [16, 0], sizes = [8, 128], strides = [1, 1]} : vector<64x128xf32> to vector<8x128xf32>
    %76 = arith.truncf %74 : vector<8x32xf32> to vector<8x32xbf16>
    %cst_20 = arith.constant dense<0.000000e+00> : vector<8x128xf32>
    %77 = tpu.matmul %76, %3, %cst_20 {dimension_numbers = #tpu.dot_dimension_numbers<[1], [0], [0], [1], [0, 0, 1, 1], [], []>} : vector<8x32xbf16>, vector<32x128xbf16>, vector<8x128xf32> -> vector<8x128xf32>
    %78 = arith.addf %75, %77 : vector<8x128xf32>
    %79 = vector.broadcast %29 : vector<1x128xf32> to vector<8x128xf32>
    %80 = arith.mulf %78, %79 : vector<8x128xf32>
    %81 = math.tanh %80 : vector<8x128xf32>
    %82 = vector.broadcast %29 : vector<1x128xf32> to vector<8x128xf32>
    %83 = arith.mulf %81, %82 : vector<8x128xf32>
    %84 = vector.broadcast %32 : vector<1x128xf32> to vector<8x128xf32>
    %85 = arith.addf %83, %84 : vector<8x128xf32>
    %86 = vector.extract_strided_slice %85 {offsets = [0, 0], sizes = [8, 32], strides = [1, 1]} : vector<8x128xf32> to vector<8x32xf32>
    %87 = vector.extract_strided_slice %85 {offsets = [0, 32], sizes = [8, 32], strides = [1, 1]} : vector<8x128xf32> to vector<8x32xf32>
    %88 = vector.extract_strided_slice %85 {offsets = [0, 64], sizes = [8, 32], strides = [1, 1]} : vector<8x128xf32> to vector<8x32xf32>
    %89 = vector.extract_strided_slice %85 {offsets = [0, 96], sizes = [8, 32], strides = [1, 1]} : vector<8x128xf32> to vector<8x32xf32>
    %90 = arith.mulf %87, %72 : vector<8x32xf32>
    %91 = arith.mulf %86, %88 : vector<8x32xf32>
    %92 = arith.addf %90, %91 : vector<8x32xf32>
    %93 = math.tanh %92 : vector<8x32xf32>
    %94 = arith.mulf %89, %93 : vector<8x32xf32>
    %95 = vector.extract_strided_slice %20 {offsets = [24, 0], sizes = [8, 128], strides = [1, 1]} : vector<64x128xf32> to vector<8x128xf32>
    %96 = arith.truncf %94 : vector<8x32xf32> to vector<8x32xbf16>
    %cst_21 = arith.constant dense<0.000000e+00> : vector<8x128xf32>
    %97 = tpu.matmul %96, %3, %cst_21 {dimension_numbers = #tpu.dot_dimension_numbers<[1], [0], [0], [1], [0, 0, 1, 1], [], []>} : vector<8x32xbf16>, vector<32x128xbf16>, vector<8x128xf32> -> vector<8x128xf32>
    %98 = arith.addf %95, %97 : vector<8x128xf32>
    %99 = vector.broadcast %29 : vector<1x128xf32> to vector<8x128xf32>
    %100 = arith.mulf %98, %99 : vector<8x128xf32>
    %101 = math.tanh %100 : vector<8x128xf32>
    %102 = vector.broadcast %29 : vector<1x128xf32> to vector<8x128xf32>
    %103 = arith.mulf %101, %102 : vector<8x128xf32>
    %104 = vector.broadcast %32 : vector<1x128xf32> to vector<8x128xf32>
    %105 = arith.addf %103, %104 : vector<8x128xf32>
    %106 = vector.extract_strided_slice %105 {offsets = [0, 0], sizes = [8, 32], strides = [1, 1]} : vector<8x128xf32> to vector<8x32xf32>
    %107 = vector.extract_strided_slice %105 {offsets = [0, 32], sizes = [8, 32], strides = [1, 1]} : vector<8x128xf32> to vector<8x32xf32>
    %108 = vector.extract_strided_slice %105 {offsets = [0, 64], sizes = [8, 32], strides = [1, 1]} : vector<8x128xf32> to vector<8x32xf32>
    %109 = vector.extract_strided_slice %105 {offsets = [0, 96], sizes = [8, 32], strides = [1, 1]} : vector<8x128xf32> to vector<8x32xf32>
    %110 = arith.mulf %107, %92 : vector<8x32xf32>
    %111 = arith.mulf %106, %108 : vector<8x32xf32>
    %112 = arith.addf %110, %111 : vector<8x32xf32>
    %113 = math.tanh %112 : vector<8x32xf32>
    %114 = arith.mulf %109, %113 : vector<8x32xf32>
    %115 = vector.extract_strided_slice %20 {offsets = [32, 0], sizes = [8, 128], strides = [1, 1]} : vector<64x128xf32> to vector<8x128xf32>
    %116 = arith.truncf %114 : vector<8x32xf32> to vector<8x32xbf16>
    %cst_22 = arith.constant dense<0.000000e+00> : vector<8x128xf32>
    %117 = tpu.matmul %116, %3, %cst_22 {dimension_numbers = #tpu.dot_dimension_numbers<[1], [0], [0], [1], [0, 0, 1, 1], [], []>} : vector<8x32xbf16>, vector<32x128xbf16>, vector<8x128xf32> -> vector<8x128xf32>
    %118 = arith.addf %115, %117 : vector<8x128xf32>
    %119 = vector.broadcast %29 : vector<1x128xf32> to vector<8x128xf32>
    %120 = arith.mulf %118, %119 : vector<8x128xf32>
    %121 = math.tanh %120 : vector<8x128xf32>
    %122 = vector.broadcast %29 : vector<1x128xf32> to vector<8x128xf32>
    %123 = arith.mulf %121, %122 : vector<8x128xf32>
    %124 = vector.broadcast %32 : vector<1x128xf32> to vector<8x128xf32>
    %125 = arith.addf %123, %124 : vector<8x128xf32>
    %126 = vector.extract_strided_slice %125 {offsets = [0, 0], sizes = [8, 32], strides = [1, 1]} : vector<8x128xf32> to vector<8x32xf32>
    %127 = vector.extract_strided_slice %125 {offsets = [0, 32], sizes = [8, 32], strides = [1, 1]} : vector<8x128xf32> to vector<8x32xf32>
    %128 = vector.extract_strided_slice %125 {offsets = [0, 64], sizes = [8, 32], strides = [1, 1]} : vector<8x128xf32> to vector<8x32xf32>
    %129 = vector.extract_strided_slice %125 {offsets = [0, 96], sizes = [8, 32], strides = [1, 1]} : vector<8x128xf32> to vector<8x32xf32>
    %130 = arith.mulf %127, %112 : vector<8x32xf32>
    %131 = arith.mulf %126, %128 : vector<8x32xf32>
    %132 = arith.addf %130, %131 : vector<8x32xf32>
    %133 = math.tanh %132 : vector<8x32xf32>
    %134 = arith.mulf %129, %133 : vector<8x32xf32>
    %135 = vector.extract_strided_slice %20 {offsets = [40, 0], sizes = [8, 128], strides = [1, 1]} : vector<64x128xf32> to vector<8x128xf32>
    %136 = arith.truncf %134 : vector<8x32xf32> to vector<8x32xbf16>
    %cst_23 = arith.constant dense<0.000000e+00> : vector<8x128xf32>
    %137 = tpu.matmul %136, %3, %cst_23 {dimension_numbers = #tpu.dot_dimension_numbers<[1], [0], [0], [1], [0, 0, 1, 1], [], []>} : vector<8x32xbf16>, vector<32x128xbf16>, vector<8x128xf32> -> vector<8x128xf32>
    %138 = arith.addf %135, %137 : vector<8x128xf32>
    %139 = vector.broadcast %29 : vector<1x128xf32> to vector<8x128xf32>
    %140 = arith.mulf %138, %139 : vector<8x128xf32>
    %141 = math.tanh %140 : vector<8x128xf32>
    %142 = vector.broadcast %29 : vector<1x128xf32> to vector<8x128xf32>
    %143 = arith.mulf %141, %142 : vector<8x128xf32>
    %144 = vector.broadcast %32 : vector<1x128xf32> to vector<8x128xf32>
    %145 = arith.addf %143, %144 : vector<8x128xf32>
    %146 = vector.extract_strided_slice %145 {offsets = [0, 0], sizes = [8, 32], strides = [1, 1]} : vector<8x128xf32> to vector<8x32xf32>
    %147 = vector.extract_strided_slice %145 {offsets = [0, 32], sizes = [8, 32], strides = [1, 1]} : vector<8x128xf32> to vector<8x32xf32>
    %148 = vector.extract_strided_slice %145 {offsets = [0, 64], sizes = [8, 32], strides = [1, 1]} : vector<8x128xf32> to vector<8x32xf32>
    %149 = vector.extract_strided_slice %145 {offsets = [0, 96], sizes = [8, 32], strides = [1, 1]} : vector<8x128xf32> to vector<8x32xf32>
    %150 = arith.mulf %147, %132 : vector<8x32xf32>
    %151 = arith.mulf %146, %148 : vector<8x32xf32>
    %152 = arith.addf %150, %151 : vector<8x32xf32>
    %153 = math.tanh %152 : vector<8x32xf32>
    %154 = arith.mulf %149, %153 : vector<8x32xf32>
    %155 = vector.extract_strided_slice %20 {offsets = [48, 0], sizes = [8, 128], strides = [1, 1]} : vector<64x128xf32> to vector<8x128xf32>
    %156 = arith.truncf %154 : vector<8x32xf32> to vector<8x32xbf16>
    %cst_24 = arith.constant dense<0.000000e+00> : vector<8x128xf32>
    %157 = tpu.matmul %156, %3, %cst_24 {dimension_numbers = #tpu.dot_dimension_numbers<[1], [0], [0], [1], [0, 0, 1, 1], [], []>} : vector<8x32xbf16>, vector<32x128xbf16>, vector<8x128xf32> -> vector<8x128xf32>
    %158 = arith.addf %155, %157 : vector<8x128xf32>
    %159 = vector.broadcast %29 : vector<1x128xf32> to vector<8x128xf32>
    %160 = arith.mulf %158, %159 : vector<8x128xf32>
    %161 = math.tanh %160 : vector<8x128xf32>
    %162 = vector.broadcast %29 : vector<1x128xf32> to vector<8x128xf32>
    %163 = arith.mulf %161, %162 : vector<8x128xf32>
    %164 = vector.broadcast %32 : vector<1x128xf32> to vector<8x128xf32>
    %165 = arith.addf %163, %164 : vector<8x128xf32>
    %166 = vector.extract_strided_slice %165 {offsets = [0, 0], sizes = [8, 32], strides = [1, 1]} : vector<8x128xf32> to vector<8x32xf32>
    %167 = vector.extract_strided_slice %165 {offsets = [0, 32], sizes = [8, 32], strides = [1, 1]} : vector<8x128xf32> to vector<8x32xf32>
    %168 = vector.extract_strided_slice %165 {offsets = [0, 64], sizes = [8, 32], strides = [1, 1]} : vector<8x128xf32> to vector<8x32xf32>
    %169 = vector.extract_strided_slice %165 {offsets = [0, 96], sizes = [8, 32], strides = [1, 1]} : vector<8x128xf32> to vector<8x32xf32>
    %170 = arith.mulf %167, %152 : vector<8x32xf32>
    %171 = arith.mulf %166, %168 : vector<8x32xf32>
    %172 = arith.addf %170, %171 : vector<8x32xf32>
    %173 = math.tanh %172 : vector<8x32xf32>
    %174 = arith.mulf %169, %173 : vector<8x32xf32>
    %175 = vector.extract_strided_slice %20 {offsets = [56, 0], sizes = [8, 128], strides = [1, 1]} : vector<64x128xf32> to vector<8x128xf32>
    %176 = arith.truncf %174 : vector<8x32xf32> to vector<8x32xbf16>
    %cst_25 = arith.constant dense<0.000000e+00> : vector<8x128xf32>
    %177 = tpu.matmul %176, %3, %cst_25 {dimension_numbers = #tpu.dot_dimension_numbers<[1], [0], [0], [1], [0, 0, 1, 1], [], []>} : vector<8x32xbf16>, vector<32x128xbf16>, vector<8x128xf32> -> vector<8x128xf32>
    %178 = arith.addf %175, %177 : vector<8x128xf32>
    %179 = vector.broadcast %29 : vector<1x128xf32> to vector<8x128xf32>
    %180 = arith.mulf %178, %179 : vector<8x128xf32>
    %181 = math.tanh %180 : vector<8x128xf32>
    %182 = vector.broadcast %29 : vector<1x128xf32> to vector<8x128xf32>
    %183 = arith.mulf %181, %182 : vector<8x128xf32>
    %184 = vector.broadcast %32 : vector<1x128xf32> to vector<8x128xf32>
    %185 = arith.addf %183, %184 : vector<8x128xf32>
    %186 = vector.extract_strided_slice %185 {offsets = [0, 0], sizes = [8, 32], strides = [1, 1]} : vector<8x128xf32> to vector<8x32xf32>
    %187 = vector.extract_strided_slice %185 {offsets = [0, 32], sizes = [8, 32], strides = [1, 1]} : vector<8x128xf32> to vector<8x32xf32>
    %188 = vector.extract_strided_slice %185 {offsets = [0, 64], sizes = [8, 32], strides = [1, 1]} : vector<8x128xf32> to vector<8x32xf32>
    %189 = vector.extract_strided_slice %185 {offsets = [0, 96], sizes = [8, 32], strides = [1, 1]} : vector<8x128xf32> to vector<8x32xf32>
    %190 = arith.mulf %187, %172 : vector<8x32xf32>
    %191 = arith.mulf %186, %188 : vector<8x32xf32>
    %192 = arith.addf %190, %191 : vector<8x32xf32>
    %193 = math.tanh %192 : vector<8x32xf32>
    %194 = arith.mulf %189, %193 : vector<8x32xf32>
    %195 = vector.extract_strided_slice %16 {offsets = [0, 0], sizes = [8, 16], strides = [1, 1]} : vector<64x16xf32> to vector<8x16xf32>
    %196 = arith.truncf %195 : vector<8x16xf32> to vector<8x16xbf16>
    %cst_26 = arith.constant dense<0.000000e+00> : vector<8x128xf32>
    %197 = tpu.matmul %196, %6, %cst_26 {dimension_numbers = #tpu.dot_dimension_numbers<[1], [0], [0], [1], [0, 0, 1, 1], [], []>} : vector<8x16xbf16>, vector<16x128xbf16>, vector<8x128xf32> -> vector<8x128xf32>
    %198 = arith.truncf %194 : vector<8x32xf32> to vector<8x32xbf16>
    %cst_27 = arith.constant dense<0.000000e+00> : vector<8x128xf32>
    %199 = tpu.matmul %198, %8, %cst_27 {dimension_numbers = #tpu.dot_dimension_numbers<[1], [0], [0], [1], [0, 0, 1, 1], [], []>} : vector<8x32xbf16>, vector<32x128xbf16>, vector<8x128xf32> -> vector<8x128xf32>
    %200 = arith.addf %197, %199 : vector<8x128xf32>
    %201 = vector.broadcast %9 : vector<1x128xf32> to vector<8x128xf32>
    %202 = arith.addf %200, %201 : vector<8x128xf32>
    %cst_28 = arith.constant 0.000000e+00 : f32
    %203 = vector.broadcast %cst_28 : f32 to vector<8x128xf32>
    %204 = arith.maximumf %202, %203 : vector<8x128xf32>
    %205 = arith.truncf %204 : vector<8x128xf32> to vector<8x128xbf16>
    %cst_29 = arith.constant dense<0.000000e+00> : vector<8x128xf32>
    %206 = tpu.matmul %205, %11, %cst_29 {dimension_numbers = #tpu.dot_dimension_numbers<[1], [0], [0], [1], [0, 0, 1, 1], [], []>} : vector<8x128xbf16>, vector<128x128xbf16>, vector<8x128xf32> -> vector<8x128xf32>
    %207 = vector.broadcast %12 : vector<1x128xf32> to vector<8x128xf32>
    %208 = arith.addf %206, %207 : vector<8x128xf32>
    %cst_30 = arith.constant 0.000000e+00 : f32
    %209 = vector.broadcast %cst_30 : f32 to vector<8x128xf32>
    %210 = arith.maximumf %208, %209 : vector<8x128xf32>
    %211 = arith.truncf %210 : vector<8x128xf32> to vector<8x128xbf16>
    %cst_31 = arith.constant dense<0.000000e+00> : vector<8x128xf32>
    %212 = tpu.matmul %211, %14, %cst_31 {dimension_numbers = #tpu.dot_dimension_numbers<[1], [0], [0], [1], [0, 0, 1, 1], [], []>} : vector<8x128xbf16>, vector<128x128xbf16>, vector<8x128xf32> -> vector<8x128xf32>
    %213 = vector.broadcast %15 : vector<1x128xf32> to vector<8x128xf32>
    %214 = arith.addf %212, %213 : vector<8x128xf32>
    %215 = vector.extract_strided_slice %214 {offsets = [0, 0], sizes = [2, 1], strides = [1, 1]} : vector<8x128xf32> to vector<2x1xf32>
    %c0_32 = arith.constant 0 : index
    %c0_33 = arith.constant 0 : index
    %216 = vector.load %arg2[%c0_32, %c0_33] : memref<2x1xf32, #tpu.memory_space<vmem>>, vector<2x1xf32>
    tpu.vector_store %arg2[%c0_32, %c0_33], %215 {strides = array<i32>} : memref<2x1xf32, #tpu.memory_space<vmem>>, vector<2x1xf32>,
    return
  }
}

</mosaic_0001>

<bundles_post_ra>
// kernel: value_network1_forward.1
= control target key start
LH: loop header
LB: loop body
LE: loop exit
PB: predicated region body
PF: predicated region fallthrough
CT: control target
= control target key end

     0   :  { %7 = vsyncpa [#allocation3], 0  ;;  %s1203_s9 = smov [#allocation2]   ;;  %s1454_s0 = inlined_call_operand.vmem [shape: f32[64,16], index: 0, kind: input, shape index: {}]   ;;  %s1455_s1 = inlined_call_operand.hbm [shape: f32[384,128], index: 1, kind: input, shape index: {}]   ;;  %s1456_s2 = inlined_call_operand.vmem [shape: f32[2,1], index: 2, kind: output, shape index: {}]  }
   0x1   :  { %s15_s10 = sshll.u32 %s1203_s9, 4  ;;  %s1179_s13 = scalar_lea.hbm %s1455_s1, 6144  ;;  %s16_s10 = int_to_ptr.vmem [resolvable:$true] %s15_s10 }
   0x2   :  { %p1180_p0 = scmp.ne.s32.totalorder %s1455_s1, %s1179_s13  ;;  %p1183_p1 = scmp.lt.u32.totalorder %s1179_s13, %s1455_s1 }
   0x4   :  { %p1185_p2 = pnand %p1183_p1, %p1180_p0 }
   0x6   :  { %1188 = shalt.err (!%p1185_p2)
}
   0x7   :  { %s1189_s18 = scalar_lea.vmem %s16_s10, 6144  ;;  %p1194_p4 = scmp.lt.s32.totalorder %s16_s10, %s16_s10 }
   0x8   :  { %p1190_p3 = scmp.ne.s32.totalorder %s16_s10, %s1189_s18  ;;  %p1195_p5 = scmp.lt.s32.totalorder %s1189_s18, %s1189_s18 }
   0xa   :  { %p1196_p6 = por %p1195_p5, %p1194_p4 }
   0xc   :  { %p1197_p7 = pnand %p1196_p6, %p1190_p3 }
   0xe   :  { %1200 = shalt.err (!%p1197_p7)
}
   0xf   :  { %s1204_s19 = smov 128   ;;  %s1205_s20 = smov 8  }
  0x10   :  { %21 = dma.hbm_to_vmem [thread:$0]  %s1455_s1, 6144, %s16_s10, [#allocation3], %s1204_s19, %s1204_s19, %s1205_s20  }
  0x11   :  { %1201 = dma.done.wait [#allocation3], 6144  }
  0x12   :  { %1202 = vsyncadd [#allocation3], 4294961152  ;;  %v1206_v0 = vmov 0.0   ;;  %vm1207_vm0 = vmmov 0   ;;  %v26_v1 = vld [vmem:[#allocation2] sm:$0xff]  ;;  %v27_v2 = vld [vmem:[#allocation2 + $0x8] sm:$0xff]  ;;  %v190_v17 = vlaneseq }
  0x13   :  { %1020 = vmatprep.subr.bf16.mxu1 %v1206_v0  ;;  %1024 = vmatprep.mubr.msk.bf16.mxu1 %vm1207_vm0, %v1206_v0  ;;  %v29_v3 = vld [vmem:[#allocation2 + $0x10] sm:$0xff]  ;;  %v28_v4 = vpack.c.bf16 %v27_v2, %v26_v1  ;;  %v30_v5 = vld [vmem:[#allocation2 + $0x18] sm:$0xff]  ;;  %v1245_v6 = vld [vmem:[%s1454_s0] sm:$0xff]  ;;  %vm112_vm1 = vcmask 130048   ;;  %v1208_v16 = vmov 0   ;;  %v1209_v25 = vmov 0.5  }
  0x14   :  { %v97_v7 = vld [vmem:[%s1454_s0 + $0x8] sm:$0xff]  ;;  %v1250_v8 = vpack.c.bf16 %v30_v5, %v29_v3  ;;  %v98_v10 = vld [vmem:[%s1454_s0 + $0x10] sm:$0xff]  ;;  %v99_v11 = vld [vmem:[%s1454_s0 + $0x18] sm:$0xff]  ;;  %v191_v18 = vand.u32 127, %v190_v17  ;;  %s1210_s30 = smov 64   ;;  %s1211_s3 = smov 32  }
  0x15   :  { %v104_v9 = vpack.c.bf16 %v97_v7, %v1245_v6  ;;  %v31_v12 = vld [vmem:[#allocation2 + $0x20] sm:$0xff]  ;;  %1010 = vmatprep.subr.bf16.mxu0 %v28_v4  ;;  %v105_v13 = vpack.c.bf16 %v99_v11, %v98_v10  ;;  %v32_v14 = vld [vmem:[#allocation2 + $0x28] sm:$0xff]  ;;  %v1278_v19 = vld [vmem:[#allocation2 + $0x30] ss:$0 sm:$0xff]  ;;  %vm197_vm5 = vcmask 261120   ;;  %vm934_vm6 = vcmask 1024  }
  0x16   :  { %1021 = vmatpush3.bf16.msra.mxu1 %v1250_v8  ;;  %1011 = vmatpush3.bf16.msra.mxu0 %v28_v4  ;;  %v1260_v15 = vpack.c.bf16 %v32_v14, %v31_v12  ;;  %vm192_vm2 = vcmp.ge.s32.totalorder %v191_v18, 64  ;;  %vm193_vm3 = vcmp.lt.s32.totalorder %v191_v18, 96  ;;  %v100_v62 = vld [vmem:[%s1454_s0 + $0x20] sm:$0xff]  ;;  %v101_v63 = vld [vmem:[%s1454_s0 + $0x28] sm:$0xff]  ;;  %v102_v1 = vld [vmem:[%s1454_s0 + $0x30] sm:$0xff] }
  0x17   :  { %1012 = vmatprep.mubr.msk.bf16.mxu0 %vm112_vm1, %v104_v9  ;;  %1022 = vmatprep.subr.bf16.mxu1 %v1206_v0  ;;  %vm194_vm4 = vmand %vm192_vm2, %vm193_vm3  ;;  %v106_v2 = vpack.c.bf16 %v101_v63, %v100_v62  ;;  %v103_v3 = vld [vmem:[%s1454_s0 + $0x38] sm:$0xff] }
  0x18   :  { %1036 = vmatprep.subr.bf16.mxu0 %v1206_v0  ;;  %v1285_v26 = vsel %vm194_vm4, 1.0, %v1209_v25  ;;  %v1288_v34 = vsel %vm194_vm4, 0.0, %v1209_v25  ;;  %v107_v4 = vpack.c.bf16 %v103_v3, %v102_v1 }
  0x19   :  { %1013 = vmatmul.mubr.msk.bf16.vlgmr.msra.gmra.mrb[0].mxu0 %vm112_vm1, %v105_v13 }
  0x1a   :  { %1023 = vmatpush3.bf16.msra.mxu1 %v1260_v15  ;;  %1037 = vmatpush3.bf16.msra.mxu0 %v1250_v8 }
  0x1b   :  { %1028 = vmatprep.subr.bf16.mxu1 %v1206_v0  ;;  %1038 = vmatprep.subr.bf16.mxu0 %v1206_v0 }
  0x1c   :  { %1016 = vmatprep.mubr.msk.bf16.mxu0 %vm112_vm1, %v106_v2 }
  0x1d   :  { %1025 = vmatmul.mubr.bf16.vlgmr.msra.gmra.mrb[0].mxu1 %v1208_v16 }
  0x1e   :  { %1029 = vmatpush3.bf16.msra.mxu1 %v1250_v8  ;;  %1032 = vmatprep.mubr.msk.bf16.mxu1 %vm1207_vm0, %v1206_v0 }
  0x1f   :  { %1030 = vmatprep.subr.bf16.mxu1 %v1206_v0  ;;  %1039 = vmatpush3.bf16.msra.mxu0 %v1260_v15 }
  0x20   :  { %1052 = vmatprep.subr.bf16.mxu0 %v1206_v0 }
  0x21   :  { %1017 = vmatmul.mubr.msk.bf16.gmra.mrb[4].mxu0 %vm112_vm1, %v107_v4 }
  0x22   :  { %1031 = vmatpush3.bf16.msra.mxu1 %v1260_v15  ;;  %1040 = vmatprep.mubr.msk.bf16.mxu0 %vm1207_vm0, %v1206_v0 }
  0x23   :  { %1044 = vmatprep.subr.bf16.mxu1 %v1206_v0 }
  0xec   :  { %v1280_v20 = vpop.f32.mrb[0].mxu0 }
  0xed   :  { %v159_v21 = vpop.f32.mrb[1].mxu0  ;;  %v168_v17 = vadd.f32 %v1280_v20, %v1278_v19 }
  0xee   :  { %v160_v22 = vadd.f32 %v1278_v19, %v159_v21  ;;  %v1283_v23 = vpop.f32.mrb[2].mxu0 }
  0xef   :  { %v162_v24 = vpop.f32.mrb[3].mxu0 }
  0xf0   :  { %v235_v27 = vpop.f32.mrb[0].mxu1  ;;  %v163_v47 = vadd.f32 %v1278_v19, %v162_v24 }
  0xf1   :  { %v241_v28 = vadd.f32 %v235_v27, %v160_v22  ;;  %v1026_v29 = vpop.f32.mrb[1].mxu1 }
  0xf2   :  { %v238_v30 = vpop.f32.mrb[2].mxu1 }
  0xf3   :  { %v242_v31 = vmul.f32 %v241_v28, %v1285_v26  ;;  %v1027_v32 = vpop.f32.mrb[3].mxu1 }
  0xf4   :  { %v1327_v11 = vpop.f32.mrb[4].mxu0 }
  0xf5   :  { %1147 = vtanh.f32 %v242_v31  ;;  %v1329_v12 = vpop.f32.mrb[5].mxu0 }
  0xf6   :  { %v1331_v13 = vpop.f32.mrb[6].mxu0 }
  0xf7   :  { %v1333_v14 = vpop.f32.mrb[7].mxu0 }
  0xff   :  { %v1148_v33 = vpop.eup %1147 }
 0x100   :  { %v244_v35 = vmul.f32 %v1148_v33, %v1285_v26 }
 0x102   :  { %v245_v36 = vadd.f32 %v244_v35, %v1288_v34 }
 0x104   :  { %248 = vrot.lane.b32.xlu0 %v245_v36, %s1210_s30  ;;  %v246_v39 = vmul.f32 0.0, %v245_v36 }
 0x176   :  { %v249_v37 = vpop.permute.xlu0 %248 }
 0x177   :  { %v251_v38 = vmul.f32 %v249_v37, %v245_v36 }
 0x179   :  { %253 = vrot.lane.b32.xlu0 %v251_v38, %s1211_s3 }
 0x1eb   :  { %v254_v40 = vpop.permute.xlu0 %253 }
 0x1ec   :  { %v256_v41 = vadd.f32 %v254_v40, %v246_v39 }
 0x1ee   :  { %1149 = vtanh.f32 %v256_v41 }
 0x1f8   :  { %v1150_v42 = vpop.eup %1149 }
 0x1f9   :  { %259 = vrot.lane.b32.xlu1 %v1150_v42, %s1210_s30 }
 0x26b   :  { %v260_v43 = vpop.permute.xlu1 %259 }
 0x26c   :  { %v262_v44 = vmul.f32 %v260_v43, %v245_v36 }
 0x26e   :  { %v263_v45 = vpack.c.bf16 %v262_v44, %v262_v44 }
 0x270   :  { %265 = vrot.lane.b32.xlu1 %v263_v45, %s1211_s3 }
 0x2e2   :  { %v266_v46 = vpop.permute.xlu1 %265 }
 0x2e3   :  { %1033 = vmatmul.mubr.msk.bf16.vlgmr.msra.gmra.mrb[4].mxu1 %vm197_vm5, %v266_v46 }
 0x2e4   :  { %1045 = vmatpush3.bf16.msra.mxu1 %v1250_v8  ;;  %1048 = vmatprep.mubr.msk.bf16.mxu1 %vm1207_vm0, %v1206_v0 }
 0x2e5   :  { %1046 = vmatprep.subr.bf16.mxu1 %v1206_v0 }
 0x2e8   :  { %1047 = vmatpush3.bf16.msra.mxu1 %v1260_v15 }
 0x2e9   :  { %1060 = vmatprep.subr.bf16.mxu1 %v1206_v0 }
 0x3b6   :  { %v304_v48 = vpop.f32.mrb[4].mxu1 }
 0x3b7   :  { %v310_v49 = vadd.f32 %v304_v48, %v163_v47  ;;  %v1034_v50 = vpop.f32.mrb[5].mxu1 }
 0x3b8   :  { %v307_v51 = vpop.f32.mrb[6].mxu1 }
 0x3b9   :  { %v311_v52 = vmul.f32 %v310_v49, %v1285_v26  ;;  %v1035_v53 = vpop.f32.mrb[7].mxu1 }
 0x3bb   :  { %1151 = vtanh.f32 %v311_v52 }
 0x3c5   :  { %v1152_v54 = vpop.eup %1151 }
 0x3c6   :  { %v313_v55 = vmul.f32 %v1152_v54, %v1285_v26 }
 0x3c8   :  { %v314_v56 = vadd.f32 %v313_v55, %v1288_v34 }
 0x3ca   :  { %317 = vrot.lane.b32.xlu0 %v314_v56, %s1210_s30  ;;  %v315_v59 = vmul.f32 %v314_v56, %v256_v41  ;;  %v171_v41 = vadd.f32 %v1283_v23, %v1278_v19 }
 0x43c   :  { %v318_v57 = vpop.permute.xlu0 %317 }
 0x43d   :  { %v320_v58 = vmul.f32 %v318_v57, %v314_v56 }
 0x43f   :  { %322 = vrot.lane.b32.xlu1 %v320_v58, %s1211_s3 }
 0x4b1   :  { %v323_v60 = vpop.permute.xlu1 %322 }
 0x4b2   :  { %v325_v61 = vadd.f32 %v323_v60, %v315_v59  ;;  %v176_v60 = vadd.f32 %v1278_v19, %v1329_v12 }
 0x4b4   :  { %1153 = vtanh.f32 %v325_v61 }
 0x4be   :  { %v1154_v5 = vpop.eup %1153 }
 0x4bf   :  { %328 = vrot.lane.b32.xlu0 %v1154_v5, %s1210_s30 }
 0x531   :  { %v329_v7 = vpop.permute.xlu0 %328 }
 0x532   :  { %v331_v9 = vmul.f32 %v329_v7, %v314_v56 }
 0x534   :  { %v332_v10 = vpack.c.bf16 %v331_v9, %v331_v9 }
 0x536   :  { %334 = vrot.lane.b32.xlu1 %v332_v10, %s1211_s3 }
 0x5a8   :  { %v335_v16 = vpop.permute.xlu1 %334 }
 0x5a9   :  { %1041 = vmatmul.mubr.msk.bf16.vlgmr.msra.gmra.mrb[8].mxu0 %vm197_vm5, %v335_v16 }
 0x5aa   :  { %1053 = vmatpush3.bf16.msra.mxu0 %v1250_v8  ;;  %1056 = vmatprep.mubr.msk.bf16.mxu0 %vm1207_vm0, %v1206_v0 }
 0x5ab   :  { %1054 = vmatprep.subr.bf16.mxu0 %v1206_v0 }
 0x5ae   :  { %1055 = vmatpush3.bf16.msra.mxu0 %v1260_v15 }
 0x5af   :  { %1068 = vmatprep.subr.bf16.mxu0 %v1206_v0 }
 0x67c   :  { %v373_v18 = vpop.f32.mrb[8].mxu0 }
 0x67d   :  { %v379_v21 = vadd.f32 %v373_v18, %v168_v17  ;;  %v1042_v22 = vpop.f32.mrb[9].mxu0 }
 0x67e   :  { %v376_v24 = vpop.f32.mrb[10].mxu0 }
 0x67f   :  { %v380_v25 = vmul.f32 %v379_v21, %v1285_v26  ;;  %v1043_v27 = vpop.f32.mrb[11].mxu0 }
 0x680   :  { %v179_v27 = vadd.f32 %v1278_v19, %v1333_v14 }
 0x681   :  { %1155 = vtanh.f32 %v380_v25 }
 0x68b   :  { %v1156_v28 = vpop.eup %1155 }
 0x68c   :  { %v382_v29 = vmul.f32 %v1156_v28, %v1285_v26 }
 0x68e   :  { %v383_v30 = vadd.f32 %v382_v29, %v1288_v34 }
 0x690   :  { %386 = vrot.lane.b32.xlu0 %v383_v30, %s1210_s30  ;;  %v384_v20 = vmul.f32 %v383_v30, %v325_v61 }
 0x702   :  { %v387_v31 = vpop.permute.xlu0 %386 }
 0x703   :  { %v389_v32 = vmul.f32 %v387_v31, %v383_v30 }
 0x705   :  { %391 = vrot.lane.b32.xlu1 %v389_v32, %s1211_s3 }
 0x777   :  { %v392_v33 = vpop.permute.xlu1 %391 }
 0x778   :  { %v394_v35 = vadd.f32 %v392_v33, %v384_v20 }
 0x77a   :  { %1157 = vtanh.f32 %v394_v35 }
 0x784   :  { %v1158_v36 = vpop.eup %1157 }
 0x785   :  { %397 = vrot.lane.b32.xlu0 %v1158_v36, %s1210_s30 }
 0x7f7   :  { %v398_v37 = vpop.permute.xlu0 %397 }
 0x7f8   :  { %v400_v38 = vmul.f32 %v398_v37, %v383_v30 }
 0x7fa   :  { %v401_v39 = vpack.c.bf16 %v400_v38, %v400_v38 }
 0x7fc   :  { %403 = vrot.lane.b32.xlu1 %v401_v39, %s1211_s3 }
 0x86e   :  { %v404_v40 = vpop.permute.xlu1 %403 }
 0x86f   :  { %1049 = vmatmul.mubr.msk.bf16.vlgmr.msra.gmra.mrb[8].mxu1 %vm197_vm5, %v404_v40 }
 0x870   :  { %1061 = vmatpush3.bf16.msra.mxu1 %v1250_v8  ;;  %1064 = vmatprep.mubr.msk.bf16.mxu1 %vm1207_vm0, %v1206_v0 }
 0x871   :  { %1062 = vmatprep.subr.bf16.mxu1 %v1206_v0 }
 0x874   :  { %1063 = vmatpush3.bf16.msra.mxu1 %v1260_v15 }
 0x875   :  { %1076 = vmatprep.subr.bf16.mxu1 %v1206_v0 }
 0x942   :  { %v442_v42 = vpop.f32.mrb[8].mxu1 }
 0x943   :  { %v448_v43 = vadd.f32 %v442_v42, %v171_v41  ;;  %v1050_v44 = vpop.f32.mrb[9].mxu1 }
 0x944   :  { %v445_v45 = vpop.f32.mrb[10].mxu1  ;;  %v184_v44 = vadd.f32 %v1327_v11, %v1278_v19 }
 0x945   :  { %v449_v46 = vmul.f32 %v448_v43, %v1285_v26  ;;  %v1051_v47 = vpop.f32.mrb[11].mxu1 }
 0x947   :  { %1159 = vtanh.f32 %v449_v46 }
 0x951   :  { %v1160_v48 = vpop.eup %1159 }
 0x952   :  { %v451_v49 = vmul.f32 %v1160_v48, %v1285_v26 }
 0x954   :  { %v452_v50 = vadd.f32 %v451_v49, %v1288_v34 }
 0x956   :  { %455 = vrot.lane.b32.xlu0 %v452_v50, %s1210_s30  ;;  %v453_v23 = vmul.f32 %v452_v50, %v394_v35 }
 0x9c8   :  { %v456_v51 = vpop.permute.xlu0 %455 }
 0x9c9   :  { %v458_v52 = vmul.f32 %v456_v51, %v452_v50 }
 0x9cb   :  { %460 = vrot.lane.b32.xlu1 %v458_v52, %s1211_s3 }
 0xa3d   :  { %v461_v53 = vpop.permute.xlu1 %460 }
 0xa3e   :  { %v463_v54 = vadd.f32 %v461_v53, %v453_v23 }
 0xa40   :  { %1161 = vtanh.f32 %v463_v54 }
 0xa4a   :  { %v1162_v55 = vpop.eup %1161 }
 0xa4b   :  { %466 = vrot.lane.b32.xlu0 %v1162_v55, %s1210_s30 }
 0xabd   :  { %v467_v56 = vpop.permute.xlu0 %466 }
 0xabe   :  { %v469_v57 = vmul.f32 %v467_v56, %v452_v50 }
 0xac0   :  { %v470_v58 = vpack.c.bf16 %v469_v57, %v469_v57 }
 0xac2   :  { %472 = vrot.lane.b32.xlu1 %v470_v58, %s1211_s3 }
 0xb34   :  { %v473_v59 = vpop.permute.xlu1 %472 }
 0xb35   :  { %1057 = vmatmul.mubr.msk.bf16.vlgmr.msra.gmra.mrb[12].mxu0 %vm197_vm5, %v473_v59 }
 0xb36   :  { %1069 = vmatpush3.bf16.msra.mxu0 %v1250_v8  ;;  %1072 = vmatprep.mubr.msk.bf16.mxu0 %vm1207_vm0, %v1206_v0 }
 0xb37   :  { %1070 = vmatprep.subr.bf16.mxu0 %v1206_v0 }
 0xb3a   :  { %1071 = vmatpush3.bf16.msra.mxu0 %v1260_v15 }
 0xb3b   :  { %1084 = vmatprep.subr.bf16.mxu0 %v1206_v0 }
 0xc08   :  { %v511_v61 = vpop.f32.mrb[12].mxu0 }
 0xc09   :  { %v517_v62 = vadd.f32 %v511_v61, %v176_v60  ;;  %v1058_v63 = vpop.f32.mrb[13].mxu0 }
 0xc0a   :  { %v514_v1 = vpop.f32.mrb[14].mxu0 }
 0xc0b   :  { %v518_v2 = vmul.f32 %v517_v62, %v1285_v26  ;;  %v1059_v3 = vpop.f32.mrb[15].mxu0  ;;  %v187_v62 = vadd.f32 %v1331_v13, %v1278_v19 }
 0xc0d   :  { %1163 = vtanh.f32 %v518_v2 }
 0xc17   :  { %v1164_v4 = vpop.eup %1163 }
 0xc18   :  { %v520_v5 = vmul.f32 %v1164_v4, %v1285_v26 }
 0xc1a   :  { %v521_v7 = vadd.f32 %v520_v5, %v1288_v34 }
 0xc1c   :  { %524 = vrot.lane.b32.xlu0 %v521_v7, %s1210_s30  ;;  %v522_v12 = vmul.f32 %v521_v7, %v463_v54 }
 0xc8e   :  { %v525_v9 = vpop.permute.xlu0 %524 }
 0xc8f   :  { %v527_v10 = vmul.f32 %v525_v9, %v521_v7 }
 0xc91   :  { %529 = vrot.lane.b32.xlu1 %v527_v10, %s1211_s3 }
 0xd03   :  { %v530_v16 = vpop.permute.xlu1 %529 }
 0xd04   :  { %v532_v17 = vadd.f32 %v530_v16, %v522_v12 }
 0xd06   :  { %1165 = vtanh.f32 %v532_v17 }
 0xd10   :  { %v1166_v18 = vpop.eup %1165 }
 0xd11   :  { %535 = vrot.lane.b32.xlu0 %v1166_v18, %s1210_s30  ;;  %v39_v18 = vld [vmem:[#allocation2 + $0x48] sm:$0xff] }
 0xd83   :  { %v536_v21 = vpop.permute.xlu0 %535 }
 0xd84   :  { %v538_v22 = vmul.f32 %v536_v21, %v521_v7  ;;  %v40_v21 = vld [vmem:[#allocation2 + $0x50] sm:$0xff] }
 0xd86   :  { %v539_v24 = vpack.c.bf16 %v538_v22, %v538_v22  ;;  %v36_v22 = vld [vmem:[#allocation2 + $0x38] sm:$0xff] }
 0xd88   :  { %541 = vrot.lane.b32.xlu1 %v539_v24, %s1211_s3  ;;  %v43_v24 = vpack.c.bf16 %v40_v21, %v39_v18 }
 0xdfa   :  { %v542_v25 = vpop.permute.xlu1 %541 }
 0xdfb   :  { %1065 = vmatmul.mubr.msk.bf16.vlgmr.msra.gmra.mrb[12].mxu1 %vm197_vm5, %v542_v25  ;;  %v37_v25 = vld [vmem:[#allocation2 + $0x40] sm:$0xff] }
 0xdfc   :  { %1077 = vmatpush3.bf16.msra.mxu1 %v1250_v8  ;;  %1080 = vmatprep.mubr.msk.bf16.mxu1 %vm1207_vm0, %v1206_v0 }
 0xdfd   :  { %1078 = vmatprep.subr.bf16.mxu1 %v1206_v0 }
 0xe00   :  { %1079 = vmatpush3.bf16.msra.mxu1 %v1260_v15 }
 0xe01   :  { %1092 = vmatprep.subr.bf16.mxu1 %v1206_v0 }
 0xece   :  { %v580_v28 = vpop.f32.mrb[12].mxu1 }
 0xecf   :  { %v586_v29 = vadd.f32 %v580_v28, %v179_v27  ;;  %v1066_v30 = vpop.f32.mrb[13].mxu1  ;;  %v41_v27 = vld [vmem:[#allocation2 + $0x58] sm:$0xff]  ;;  %v42_v28 = vld [vmem:[#allocation2 + $0x60] sm:$0xff] }
 0xed0   :  { %v583_v31 = vpop.f32.mrb[14].mxu1 }
 0xed1   :  { %v587_v32 = vmul.f32 %v586_v29, %v1285_v26  ;;  %v1067_v20 = vpop.f32.mrb[15].mxu1  ;;  %v44_v29 = vpack.c.bf16 %v42_v28, %v41_v27 }
 0xed3   :  { %1167 = vtanh.f32 %v587_v32 }
 0xedd   :  { %v1168_v8 = vpop.eup %1167 }
 0xede   :  { %v589_v33 = vmul.f32 %v1168_v8, %v1285_v26 }
 0xee0   :  { %v590_v35 = vadd.f32 %v589_v33, %v1288_v34 }
 0xee2   :  { %593 = vrot.lane.b32.xlu0 %v590_v35, %s1210_s30  ;;  %v591_v14 = vmul.f32 %v590_v35, %v532_v17 }
 0xf54   :  { %v594_v15 = vpop.permute.xlu0 %593 }
 0xf55   :  { %v596_v36 = vmul.f32 %v594_v15, %v590_v35  ;;  %v46_v15 = vld [vmem:[#allocation2 + $0x70] sm:$0xff] }
 0xf57   :  { %598 = vrot.lane.b32.xlu1 %v596_v36, %s1211_s3  ;;  %v47_v36 = vld [vmem:[#allocation2 + $0x78] sm:$0xff] }
 0xfc9   :  { %v599_v37 = vpop.permute.xlu1 %598 }
 0xfca   :  { %v601_v38 = vadd.f32 %v599_v37, %v591_v14  ;;  %v62_v14 = vpack.c.bf16 %v47_v36, %v46_v15  ;;  %v48_v37 = vld [vmem:[#allocation2 + $0x80] sm:$0xff] }
 0xfcc   :  { %1169 = vtanh.f32 %v601_v38 }
 0xfd6   :  { %v1170_v39 = vpop.eup %1169 }
 0xfd7   :  { %604 = vrot.lane.b32.xlu0 %v1170_v39, %s1210_s30 }
0x1049   :  { %v605_v40 = vpop.permute.xlu0 %604 }
0x104a   :  { %v607_v41 = vmul.f32 %v605_v40, %v590_v35 }
0x104c   :  { %v608_v42 = vpack.c.bf16 %v607_v41, %v607_v41  ;;  %v50_v41 = vld [vmem:[#allocation2 + $0x90] sm:$0xff] }
0x104e   :  { %610 = vrot.lane.b32.xlu1 %v608_v42, %s1211_s3  ;;  %v51_v42 = vld [vmem:[#allocation2 + $0x98] sm:$0xff] }
0x10c0   :  { %v611_v43 = vpop.permute.xlu1 %610 }
0x10c1   :  { %1073 = vmatmul.mubr.msk.bf16.vlgmr.msra.gmra.mrb[16].mxu0 %vm197_vm5, %v611_v43  ;;  %v64_v43 = vpack.c.bf16 %v51_v42, %v50_v41 }
0x10c2   :  { %1088 = vmatprep.mubr.msk.bf16.mxu0 %vm1207_vm0, %v1206_v0  ;;  %1085 = vmatpush3.bf16.msra.mxu0 %v43_v24 }
0x10c3   :  { %1086 = vmatprep.subr.bf16.mxu0 %v1206_v0 }
0x10c6   :  { %1087 = vmatpush3.bf16.msra.mxu0 %v44_v29 }
0x10c7   :  { %1098 = vmatprep.subr.bf16.mxu0 %v1206_v0 }
0x1194   :  { %v649_v45 = vpop.f32.mrb[16].mxu0 }
0x1195   :  { %v655_v46 = vadd.f32 %v649_v45, %v184_v44  ;;  %v1074_v47 = vpop.f32.mrb[17].mxu0  ;;  %v52_v44 = vld [vmem:[#allocation2 + $0xa0] sm:$0xff]  ;;  %v53_v45 = vld [vmem:[#allocation2 + $0xa8] sm:$0xff] }
0x1196   :  { %v652_v48 = vpop.f32.mrb[18].mxu0  ;;  %v54_v47 = vld [vmem:[#allocation2 + $0xb0] sm:$0xff] }
0x1197   :  { %v656_v49 = vmul.f32 %v655_v46, %v1285_v26  ;;  %v1075_v50 = vpop.f32.mrb[19].mxu0  ;;  %v65_v46 = vpack.c.bf16 %v53_v45, %v52_v44  ;;  %v55_v48 = vld [vmem:[#allocation2 + $0xb8] sm:$0xff] }
0x1198   :  { %v56_v50 = vld [vmem:[#allocation2 + $0xc0] sm:$0xff] }
0x1199   :  { %1171 = vtanh.f32 %v656_v49  ;;  %v66_v49 = vpack.c.bf16 %v55_v48, %v54_v47 }
0x11a3   :  { %v1172_v51 = vpop.eup %1171 }
0x11a4   :  { %v658_v52 = vmul.f32 %v1172_v51, %v1285_v26  ;;  %v57_v51 = vld [vmem:[#allocation2 + $0xc8] sm:$0xff] }
0x11a6   :  { %v659_v23 = vadd.f32 %v658_v52, %v1288_v34  ;;  %v67_v52 = vpack.c.bf16 %v57_v51, %v56_v50 }
0x11a8   :  { %662 = vrot.lane.b32.xlu0 %v659_v23, %s1210_s30  ;;  %v660_v11 = vmul.f32 %v659_v23, %v601_v38  ;;  %v49_v38 = vld [vmem:[#allocation2 + $0x88] sm:$0xff] }
0x11a9   :  { %v63_v40 = vpack.c.bf16 %v49_v38, %v48_v37  ;;  %v957_v37 = vld [vmem:[#allocation2 + $0x178] ss:$0 sm:$0xff] }
0x121a   :  { %v663_v53 = vpop.permute.xlu0 %662 }
0x121b   :  { %v665_v54 = vmul.f32 %v663_v53, %v659_v23  ;;  %v59_v53 = vld [vmem:[#allocation2 + $0xd8] sm:$0xff] }
0x121d   :  { %667 = vrot.lane.b32.xlu1 %v665_v54, %s1211_s3 }
0x128f   :  { %v668_v55 = vpop.permute.xlu1 %667 }
0x1290   :  { %v670_v56 = vadd.f32 %v668_v55, %v660_v11  ;;  %v60_v11 = vld [vmem:[#allocation2 + $0xe0] sm:$0xff]  ;;  %v61_v55 = vld [vmem:[#allocation2 + $0xe8] sm:$0xff] }
0x1292   :  { %1173 = vtanh.f32 %v670_v56 }
0x129c   :  { %v1174_v57 = vpop.eup %1173 }
0x129d   :  { %673 = vrot.lane.b32.xlu0 %v1174_v57, %s1210_s30  ;;  %v71_v57 = vld [vmem:[#allocation2 + $0xf8] sm:$0xff] }
0x130f   :  { %v674_v58 = vpop.permute.xlu0 %673 }
0x1310   :  { %v676_v59 = vmul.f32 %v674_v58, %v659_v23  ;;  %v58_v23 = vld [vmem:[#allocation2 + $0xd0] sm:$0xff]  ;;  %v72_v58 = vld [vmem:[#allocation2 + $0x100] sm:$0xff] }
0x1311   :  { %v68_v54 = vpack.c.bf16 %v59_v53, %v58_v23 }
0x1312   :  { %v677_v60 = vpack.c.bf16 %v676_v59, %v676_v59  ;;  %v73_v59 = vld [vmem:[#allocation2 + $0x108] sm:$0xff] }
0x1314   :  { %679 = vrot.lane.b32.xlu1 %v677_v60, %s1211_s3  ;;  %v87_v60 = vpack.c.bf16 %v72_v58, %v71_v57 }
0x1386   :  { %v680_v61 = vpop.permute.xlu1 %679 }
0x1387   :  { %1081 = vmatmul.mubr.msk.bf16.vlgmr.msra.gmra.mrb[16].mxu1 %vm197_vm5, %v680_v61  ;;  %v74_v61 = vld [vmem:[#allocation2 + $0x110] sm:$0xff] }
0x1388   :  { %1094 = vmatprep.mubr.msk.bf16.mxu1 %vm1207_vm0, %v1206_v0 }
0x145a   :  { %v718_v63 = vpop.f32.mrb[16].mxu1 }
0x145b   :  { %v724_v1 = vadd.f32 %v718_v63, %v187_v62  ;;  %v1082_v2 = vpop.f32.mrb[17].mxu1  ;;  %v88_v62 = vpack.c.bf16 %v74_v61, %v73_v59  ;;  %v75_v63 = vld [vmem:[#allocation2 + $0x118] sm:$0xff] }
0x145c   :  { %v721_v3 = vpop.f32.mrb[18].mxu1 }
0x145d   :  { %v725_v4 = vmul.f32 %v724_v1, %v1285_v26  ;;  %v1083_v5 = vpop.f32.mrb[19].mxu1  ;;  %v76_v1 = vld [vmem:[#allocation2 + $0x120] sm:$0xff]  ;;  %v77_v3 = vld [vmem:[#allocation2 + $0x128] sm:$0xff] }
0x145e   :  { %v89_v2 = vpack.c.bf16 %v76_v1, %v75_v63 }
0x145f   :  { %1175 = vtanh.f32 %v725_v4  ;;  %v78_v4 = vld [vmem:[#allocation2 + $0x130] sm:$0xff] }
0x1460   :  { %v90_v5 = vpack.c.bf16 %v78_v4, %v77_v3 }
0x1469   :  { %v1176_v7 = vpop.eup %1175 }
0x146a   :  { %v727_v9 = vmul.f32 %v1176_v7, %v1285_v26  ;;  %v38_v26 = vpack.c.bf16 %v37_v25, %v36_v22  ;;  %v79_v7 = vld [vmem:[#allocation2 + $0x138] sm:$0xff] }
0x146c   :  { %v728_v10 = vadd.f32 %v727_v9, %v1288_v34  ;;  %v746_v34 = vpack.c.bf16 %v1245_v6, %v1245_v6  ;;  %1093 = vmatpush3.bf16.msra.mxu1 %v38_v26  ;;  %v80_v9 = vld [vmem:[#allocation2 + $0x140] sm:$0xff]  ;;  %v83_v26 = vld [vmem:[#allocation2 + $0x158] sm:$0xff] }
0x146d   :  { %1118 = vmatprep.subr.bf16.mxu1 %v1206_v0 }
0x146e   :  { %731 = vrot.lane.b32.xlu0 %v728_v10, %s1210_s30  ;;  %v729_v19 = vmul.f32 %v728_v10, %v670_v56  ;;  %v69_v56 = vpack.c.bf16 %v61_v55, %v60_v11 }
0x146f   :  { %1095 = vmatmul.mubr.msk.bf16.vlgmr.msra.gmra.mrb[20].mxu1 %vm112_vm1, %v746_v34  ;;  %v84_v34 = vld [vmem:[#allocation2 + $0x160] sm:$0xff] }
0x1470   :  { %1134 = vmatprep.mubr.msk.bf16.mxu1 %vm1207_vm0, %v1206_v0  ;;  %1119 = vmatpush3.bf16.msra.mxu1 %v87_v60  ;;  %v93_v29 = vpack.c.bf16 %v84_v34, %v83_v26 }
0x1471   :  { %1120 = vmatprep.subr.bf16.mxu1 %v1206_v0 }
0x1474   :  { %1121 = vmatpush3.bf16.msra.mxu1 %v88_v62 }
0x1475   :  { %1122 = vmatprep.subr.bf16.mxu1 %v1206_v0 }
0x1478   :  { %1123 = vmatpush3.bf16.msra.mxu1 %v89_v2 }
0x1479   :  { %1124 = vmatprep.subr.bf16.mxu1 %v1206_v0 }
0x147c   :  { %1125 = vmatpush3.bf16.msra.mxu1 %v90_v5 }
0x147d   :  { %1126 = vmatprep.subr.bf16.mxu1 %v1206_v0 }
0x14e0   :  { %v732_v12 = vpop.permute.xlu0 %731 }
0x14e1   :  { %v734_v16 = vmul.f32 %v732_v12, %v728_v10  ;;  %v81_v12 = vld [vmem:[#allocation2 + $0x148] sm:$0xff] }
0x14e3   :  { %736 = vrot.lane.b32.xlu1 %v734_v16, %s1211_s3  ;;  %v82_v16 = vld [vmem:[#allocation2 + $0x150] sm:$0xff] }
0x1542   :  { %v1431_v20 = vpop.f32.mrb[20].mxu1 }
0x1543   :  { %v1096_v8 = vpop.f32.mrb[21].mxu1 }
0x1544   :  { %v834_v33 = vpop.f32.mrb[22].mxu1 }
0x1545   :  { %v1097_v35 = vpop.f32.mrb[23].mxu1 }
0x1555   :  { %v737_v13 = vpop.permute.xlu1 %736 }
0x1556   :  { %v739_v17 = vadd.f32 %v737_v13, %v729_v19  ;;  %v92_v19 = vpack.c.bf16 %v82_v16, %v81_v12  ;;  %v955_v13 = vld [vmem:[#allocation2 + $0x68] ss:$0 sm:$0xff] }
0x1558   :  { %1177 = vtanh.f32 %v739_v17 }
0x1562   :  { %v1178_v30 = vpop.eup %1177 }
0x1563   :  { %742 = vrot.lane.b32.xlu0 %v1178_v30, %s1210_s30  ;;  %v85_v30 = vld [vmem:[#allocation2 + $0x168] sm:$0xff] }
0x15d5   :  { %v743_v31 = vpop.permute.xlu0 %742 }
0x15d6   :  { %v745_v6 = vmul.f32 %v743_v31, %v728_v10  ;;  %v91_v10 = vpack.c.bf16 %v80_v9, %v79_v7  ;;  %v86_v31 = vld [vmem:[#allocation2 + $0x170] sm:$0xff] }
0x15d8   :  { %v747_v32 = vpack.c.bf16 %v745_v6, %v745_v6  ;;  %1127 = vmatpush3.bf16.msra.mxu1 %v91_v10  ;;  %v94_v6 = vpack.c.bf16 %v86_v31, %v85_v30 }
0x15d9   :  { %1128 = vmatprep.subr.bf16.mxu1 %v1206_v0 }
0x15da   :  { %749 = vrot.lane.b32.xlu1 %v747_v32, %s1211_s3  ;;  %v956_v32 = vld [vmem:[#allocation2 + $0xf0] ss:$0 sm:$0xff] }
0x15dc   :  { %1129 = vmatpush3.bf16.msra.mxu1 %v92_v19 }
0x15dd   :  { %1130 = vmatprep.subr.bf16.mxu1 %v1206_v0 }
0x15e0   :  { %1131 = vmatpush3.bf16.msra.mxu1 %v93_v29 }
0x15e1   :  { %1132 = vmatprep.subr.bf16.mxu1 %v1206_v0 }
0x15e4   :  { %1133 = vmatpush3.bf16.msra.mxu1 %v94_v6 }
0x164c   :  { %v750_v39 = vpop.permute.xlu1 %749 }
0x164d   :  { %1089 = vmatmul.mubr.msk.bf16.vlgmr.msra.gmra.mrb[20].mxu0 %vm197_vm5, %v750_v39 }
0x164e   :  { %1099 = vmatpush3.bf16.msra.mxu0 %v62_v14  ;;  %1114 = vmatprep.mubr.msk.bf16.mxu0 %vm1207_vm0, %v1206_v0 }
0x164f   :  { %1100 = vmatprep.subr.bf16.mxu0 %v1206_v0 }
0x1652   :  { %1101 = vmatpush3.bf16.msra.mxu0 %v63_v40 }
0x1653   :  { %1102 = vmatprep.subr.bf16.mxu0 %v1206_v0 }
0x1656   :  { %1103 = vmatpush3.bf16.msra.mxu0 %v64_v43 }
0x1657   :  { %1104 = vmatprep.subr.bf16.mxu0 %v1206_v0 }
0x165a   :  { %1105 = vmatpush3.bf16.msra.mxu0 %v65_v46 }
0x165b   :  { %1106 = vmatprep.subr.bf16.mxu0 %v1206_v0 }
0x165e   :  { %1107 = vmatpush3.bf16.msra.mxu0 %v66_v49 }
0x165f   :  { %1108 = vmatprep.subr.bf16.mxu0 %v1206_v0 }
0x1662   :  { %1109 = vmatpush3.bf16.msra.mxu0 %v67_v52 }
0x1663   :  { %1110 = vmatprep.subr.bf16.mxu0 %v1206_v0 }
0x1666   :  { %1111 = vmatpush3.bf16.msra.mxu0 %v68_v54 }
0x1667   :  { %1112 = vmatprep.subr.bf16.mxu0 %v1206_v0 }
0x166a   :  { %1113 = vmatpush3.bf16.msra.mxu0 %v69_v56 }
0x1720   :  { %v788_v17 = vpop.f32.mrb[20].mxu0 }
0x1721   :  { %v832_v18 = vadd.f32 %v1431_v20, %v788_v17  ;;  %v1090_v21 = vpop.f32.mrb[21].mxu0 }
0x1722   :  { %v791_v22 = vpop.f32.mrb[22].mxu0 }
0x1723   :  { %v841_v24 = vadd.f32 %v955_v13, %v832_v18  ;;  %v1091_v25 = vpop.f32.mrb[23].mxu0 }
0x1725   :  { %v842_v27 = vmax.f32 %v841_v24, 0.0 }
0x1727   :  { %v843_v28 = vpack.c.bf16 %v842_v27, %v842_v27 }
0x1729   :  { %1115 = vmatmul.mubr.bf16.vlgmr.msra.gmra.mrb[24].mxu0 %v843_v28 }
0x17fc   :  { %v882_v8 = vpop.f32.mrb[24].mxu0 }
0x17fd   :  { %v883_v20 = vadd.f32 %v956_v32, %v882_v8  ;;  %v1116_v33 = vpop.f32.mrb[25].mxu0 }
0x17fe   :  { %v885_v35 = vpop.f32.mrb[26].mxu0 }
0x17ff   :  { %v888_v15 = vmax.f32 %v883_v20, 0.0  ;;  %v1117_v36 = vpop.f32.mrb[27].mxu0 }
0x1801   :  { %v889_v14 = vpack.c.bf16 %v888_v15, %v888_v15 }
0x1803   :  { %1135 = vmatmul.mubr.bf16.vlgmr.msra.gmra.mrb[24].mxu1 %v889_v14 }
0x18d6   :  { %v928_v38 = vpop.f32.mrb[24].mxu1 }
0x18d7   :  { %v929_v39 = vadd.f32 %v957_v37, %v928_v38  ;;  %v1136_v40 = vpop.f32.mrb[25].mxu1 }
0x18d8   :  { %v931_v41 = vpop.f32.mrb[26].mxu1 }
0x18d9   :  { %935 = vst.msk [vmem:[%s1456_s2] sm:$0x3] %vm934_vm6, %v929_v39  ;;  %v1137_v0 = vpop.f32.mrb[27].mxu1 }
0x18da   :  { %940 = vsyncpa [#allocation3], 1 }

</bundles_post_ra>
